<compile_context>
chip_gen: v6e
topology: v6e:2x2x1
jax: 0.10.0
libtpu: 0.0.40
codegen_flags: <defaults>
</compile_context>

<pallas_src>
import functools

import jax
import jax.numpy as jnp
from jax.experimental import pallas as pl
from jax.experimental.pallas import tpu as pltpu


# ----------------------------------------------------------------------------
# Pallas kernel: fused (conv3x3 + BN + ReLU) x 2, batch folded into matmul M
# ----------------------------------------------------------------------------
def _double_conv_kernel(x_ref, wb1_ref, sc1_ref, sh1_ref,
                        wb2_ref, sc2_ref, sh2_ref, o_ref,
                        xpad_ref, midpad_ref, *, N, H, W):
    # x_ref:      (N*H, W*Cin)        row-flattened NHWC input
    # wb1_ref:    (3, W*Cin,  W*Cmid) banded conv1 weights, one slab per kh tap
    # sc1/sh1:    (1, W*Cmid)         folded BN1 scale/shift, tiled along W
    # wb2_ref:    (3, W*Cmid, W*Cout) banded conv2 weights
    # sc2/sh2:    (1, W*Cout)
    # o_ref:      (N*H, W*Cout)       lane-dense output rows
    # xpad_ref:   (N*(H+2), W*Cin)    VMEM scratch, row-padded conv1 input
    # midpad_ref: (N*(H+2), W*Cmid)   VMEM scratch, row-padded conv2 input
    Hp = H + 2
    M = N * Hp - 2  # rows computed per conv (valid rows + discarded boundary rows)

    # ---- SAME padding (rows) built in VMEM: zero-init, copy interior -------
    xpad_ref[...] = jnp.zeros_like(xpad_ref)
    for n in range(N):
        xpad_ref[n * Hp + 1: n * Hp + 1 + H, :] = x_ref[n * H: (n + 1) * H, :]

    # ---- conv1: 3 banded MXU matmuls (one per kh), K = W*Cin ---------------
    acc = jnp.zeros((M, wb1_ref.shape[-1]), jnp.float32)
    for kh in range(3):
        acc = acc + jnp.dot(xpad_ref[kh: kh + M, :], wb1_ref[kh],
                            preferred_element_type=jnp.float32)
    y1 = jnp.maximum(acc * sc1_ref[...] + sh1_ref[...], 0.0)   # BN1 + ReLU

    # ---- conv2 input staged in VMEM (intermediate never touches HBM) -------
    midpad_ref[...] = jnp.zeros_like(midpad_ref)
    for n in range(N):
        midpad_ref[n * Hp + 1: n * Hp + 1 + H, :] = y1[n * Hp: n * Hp + H, :]

    # ---- conv2: 3 banded MXU matmuls, K = W*Cmid ----------------------------
    acc2 = jnp.zeros((M, wb2_ref.shape[-1]), jnp.float32)
    for kh in range(3):
        acc2 = acc2 + jnp.dot(midpad_ref[kh: kh + M, :], wb2_ref[kh],
                              preferred_element_type=jnp.float32)
    y2 = jnp.maximum(acc2 * sc2_ref[...] + sh2_ref[...], 0.0)  # BN2 + ReLU

    # ---- write valid rows (drop the per-batch boundary rows) ---------------
    for n in range(N):
        o_ref[n * H: (n + 1) * H, :] = y2[n * Hp: n * Hp + H, :].astype(o_ref.dtype)


# ----------------------------------------------------------------------------
# Weight preprocessing: 3x3 HWIO kernel -> 3 banded (W*Cin, W*Cout) matrices
# ----------------------------------------------------------------------------
def _banded_weights(w_hwio, W):
    """Wb[kh, w_in*Cin+ci, w_out*Cout+co] = w[kh, w_in-w_out+1, ci, co]
    (zero outside the 3-wide band) -- SAME conv along W folded into the K dim."""
    Kh, Kw, Cin, Cout = w_hwio.shape
    # E[kw, w_in, w_out] = 1 iff w_in == w_out + kw - 1
    E = jnp.stack([jnp.eye(W, W, k=1 - kw, dtype=w_hwio.dtype) for kw in range(Kw)])
    Wb = jnp.einsum('xpw,hxio->hpiwo', E, w_hwio)      # (3, W, Cin, W, Cout)
    return Wb.reshape(Kh, W * Cin, W * Cout)


# ----------------------------------------------------------------------------
# Wrapper: NCHW in / NCHW out, single fused pallas_call
# ----------------------------------------------------------------------------
def double_conv_apply(x_nchw, params):
    N, Cin, H, W = x_nchw.shape
    Cmid = params['w1'].shape[-1]
    Cout = params['w2'].shape[-1]

    # NCHW -> NHWC -> row-flat (N*H, W*Cin); channels+width map to the lane axis.
    x_rows = jnp.transpose(x_nchw, (0, 2, 3, 1)).reshape(N * H, W * Cin)

    wb1 = _banded_weights(params['w1'], W)
    wb2 = _banded_weights(params['w2'], W)
    sc1 = jnp.tile(params['scale1'], W)[None, :]
    sh1 = jnp.tile(params['shift1'], W)[None, :]
    sc2 = jnp.tile(params['scale2'], W)[None, :]
    sh2 = jnp.tile(params['shift2'], W)[None, :]

    kernel = functools.partial(_double_conv_kernel, N=N, H=H, W=W)

    out_rows = pl.pallas_call(
        kernel,
        out_shape=jax.ShapeDtypeStruct((N * H, W * Cout), jnp.float32),
        grid_spec=pltpu.PrefetchScalarGridSpec(
            num_scalar_prefetch=0,
            grid=(1,),  # everything fits in VMEM; one program, batch folded into M
            in_specs=[
                pl.BlockSpec((N * H, W * Cin), lambda i: (0, 0)),
                pl.BlockSpec((3, W * Cin, W * Cmid), lambda i: (0, 0, 0)),
                pl.BlockSpec((1, W * Cmid), lambda i: (0, 0)),
                pl.BlockSpec((1, W * Cmid), lambda i: (0, 0)),
                pl.BlockSpec((3, W * Cmid, W * Cout), lambda i: (0, 0, 0)),
                pl.BlockSpec((1, W * Cout), lambda i: (0, 0)),
                pl.BlockSpec((1, W * Cout), lambda i: (0, 0)),
            ],
            out_specs=pl.BlockSpec((N * H, W * Cout), lambda i: (0, 0)),
            scratch_shapes=[
                pltpu.VMEM((N * (H + 2), W * Cin), jnp.float32),
                pltpu.VMEM((N * (H + 2), W * Cmid), jnp.float32),
            ],
        ),
        compiler_params=pltpu.CompilerParams(
            dimension_semantics=("arbitrary",)),
    )(x_rows, wb1, sc1, sh1, wb2, sc2, sh2)

    y = out_rows.reshape(N, H, W, Cout)
    return jnp.transpose(y, (0, 3, 1, 2))   # back to NCHW


# ----------------------------------------------------------------------------
# Deterministic synthetic parameters (Conv2d bias + eval-mode BN folded)
# ----------------------------------------------------------------------------
def _make_conv_bn(key, cin, cout):
    kw, kb, kg, kbt, km, kv = jax.random.split(key, 6)
    w_oihw = 0.05 * jax.random.normal(kw, (cout, cin, 3, 3), jnp.float32)
    w_hwio = jnp.transpose(w_oihw, (2, 3, 1, 0))
    conv_b = 0.05 * jax.random.normal(kb, (cout,), jnp.float32)
    gamma = 1.0 + 0.1 * jax.random.normal(kg, (cout,), jnp.float32)
    beta = 0.05 * jax.random.normal(kbt, (cout,), jnp.float32)
    r_mean = 0.05 * jax.random.normal(km, (cout,), jnp.float32)
    r_var = 1.0 + 0.1 * jax.random.uniform(kv, (cout,), jnp.float32)
    eps = 1e-5
    scale = gamma / jnp.sqrt(r_var + eps)       # folded eval-mode BN
    shift = (conv_b - r_mean) * scale + beta
    return w_hwio, scale, shift


def make_double_conv_params(key, in_ch, out_ch):
    k1, k2 = jax.random.split(key)
    w1, s1, b1 = _make_conv_bn(k1, in_ch, out_ch)
    w2, s2, b2 = _make_conv_bn(k2, out_ch, out_ch)
    return {'w1': w1, 'scale1': s1, 'shift1': b1,
            'w2': w2, 'scale2': s2, 'shift2': b2}


# ----------------------------------------------------------------------------
# Plain-JAX reference (for correctness check)
# ----------------------------------------------------------------------------
def double_conv_ref(x_nchw, params):
    def conv_bn_relu(x, w_hwio, scale, shift):
        w_oihw = jnp.transpose(w_hwio, (3, 2, 0, 1))
        y = jax.lax.conv_general_dilated(
            x, w_oihw, window_strides=(1, 1), padding=((1, 1), (1, 1)),
            dimension_numbers=('NCHW', 'OIHW', 'NCHW'),
            precision=jax.lax.Precision.HIGHEST)
        y = y * scale[None, :, None, None] + shift[None, :, None, None]
        return jnp.maximum(y, 0.0)

    x = conv_bn_relu(x_nchw, params['w1'], params['scale1'], params['shift1'])
    x = conv_bn_relu(x, params['w2'], params['scale2'], params['shift2'])
    return x


# ----------------------------------------------------------------------------
if __name__ == "__main__":
    key = jax.random.PRNGKey(0)
    N, in_ch, out_ch, H, W = 2, 4, 8, 16, 16

    k_p, k_x = jax.random.split(key)
    params = make_double_conv_params(k_p, in_ch, out_ch)
    x = jax.random.normal(k_x, (N, in_ch, H, W), jnp.float32)

    fwd = jax.jit(functools.partial(double_conv_apply, params=params))
    out = fwd(x)
    jax.block_until_ready(out)

    assert out.shape == (N, out_ch, H, W), out.shape

    ref = double_conv_ref(x, params)
    max_err = float(jnp.max(jnp.abs(out - ref)))
    assert jnp.allclose(out, ref, atol=2e-3, rtol=2e-3), max_err

    print("KERNEL_OK")
</pallas_src>

<mosaic_0001>
module attributes {stable_mosaic.version = 11 : i64} {
  func.func @_double_conv_kernel(%arg0: i32, %arg1: memref<32x64xf32, #tpu.memory_space<vmem>>, %arg2: memref<3x64x128xf32, #tpu.memory_space<vmem>>, %arg3: memref<1x128xf32, #tpu.memory_space<vmem>>, %arg4: memref<1x128xf32, #tpu.memory_space<vmem>>, %arg5: memref<3x128x128xf32, #tpu.memory_space<vmem>>, %arg6: memref<1x128xf32, #tpu.memory_space<vmem>>, %arg7: memref<1x128xf32, #tpu.memory_space<vmem>>, %arg8: memref<32x128xf32, #tpu.memory_space<vmem>>, %arg9: memref<36x64xf32, #tpu.memory_space<vmem>>, %arg10: memref<36x128xf32, #tpu.memory_space<vmem>>) attributes {dimension_semantics = [#tpu.dimension_semantics<arbitrary>], iteration_bounds = array<i64: 1>, scalar_prefetch = 0 : i64, scratch_operands = 2 : i64, tpu.core_type = #tpu.core_type<tc>, window_params = [{pipeline_mode = #tpu.pipeline_mode<synchronous>, transform_indices = @transform_0, window_bounds = array<i64: 32, 64>}, {pipeline_mode = #tpu.pipeline_mode<synchronous>, transform_indices = @transform_1, window_bounds = array<i64: 3, 64, 128>}, {pipeline_mode = #tpu.pipeline_mode<synchronous>, transform_indices = @transform_2, window_bounds = array<i64: 1, 128>}, {pipeline_mode = #tpu.pipeline_mode<synchronous>, transform_indices = @transform_3, window_bounds = array<i64: 1, 128>}, {pipeline_mode = #tpu.pipeline_mode<synchronous>, transform_indices = @transform_4, window_bounds = array<i64: 3, 128, 128>}, {pipeline_mode = #tpu.pipeline_mode<synchronous>, transform_indices = @transform_5, window_bounds = array<i64: 1, 128>}, {pipeline_mode = #tpu.pipeline_mode<synchronous>, transform_indices = @transform_6, window_bounds = array<i64: 1, 128>}, {pipeline_mode = #tpu.pipeline_mode<synchronous>, transform_indices = @transform_7, window_bounds = array<i64: 32, 128>}]} {
    %cst = arith.constant 0.000000e+00 : f32
    %0 = vector.broadcast %cst : f32 to vector<36x64xf32>
    %c0 = arith.constant 0 : index
    %c0_0 = arith.constant 0 : index
    %1 = vector.load %arg9[%c0, %c0_0] : memref<36x64xf32, #tpu.memory_space<vmem>>, vector<36x64xf32>
    tpu.vector_store %arg9[%c0, %c0_0], %0 {strides = array<i32>} : memref<36x64xf32, #tpu.memory_space<vmem>>, vector<36x64xf32>,
    %c0_1 = arith.constant 0 : index
    %c0_2 = arith.constant 0 : index
    %2 = vector.load %arg1[%c0_1, %c0_2] : memref<32x64xf32, #tpu.memory_space<vmem>>, vector<16x64xf32>
    %c1 = arith.constant 1 : index
    %c0_3 = arith.constant 0 : index
    %3 = vector.load %arg9[%c1, %c0_3] : memref<36x64xf32, #tpu.memory_space<vmem>>, vector<16x64xf32>
    tpu.vector_store %arg9[%c1, %c0_3], %2 {strides = array<i32>} : memref<36x64xf32, #tpu.memory_space<vmem>>, vector<16x64xf32>,
    %c16 = arith.constant 16 : index
    %c0_4 = arith.constant 0 : index
    %4 = vector.load %arg1[%c16, %c0_4] : memref<32x64xf32, #tpu.memory_space<vmem>>, vector<16x64xf32>
    %c19 = arith.constant 19 : index
    %c0_5 = arith.constant 0 : index
    %5 = vector.load %arg9[%c19, %c0_5] : memref<36x64xf32, #tpu.memory_space<vmem>>, vector<16x64xf32>
    tpu.vector_store %arg9[%c19, %c0_5], %4 {strides = array<i32>} : memref<36x64xf32, #tpu.memory_space<vmem>>, vector<16x64xf32>,
    %cst_6 = arith.constant 0.000000e+00 : f32
    %6 = vector.broadcast %cst_6 : f32 to vector<34x128xf32>
    %c0_7 = arith.constant 0 : index
    %c0_8 = arith.constant 0 : index
    %7 = vector.load %arg9[%c0_7, %c0_8] : memref<36x64xf32, #tpu.memory_space<vmem>>, vector<34x64xf32>
    %c0_9 = arith.constant 0 : index
    %c0_10 = arith.constant 0 : index
    %c0_11 = arith.constant 0 : index
    %8 = vector.load %arg2[%c0_9, %c0_10, %c0_11] : memref<3x64x128xf32, #tpu.memory_space<vmem>>, vector<1x64x128xf32>
    %9 = vector.shape_cast %8 : vector<1x64x128xf32> to vector<64x128xf32>
    %cst_12 = arith.constant dense<0.000000e+00> : vector<34x128xf32>
    %10 = tpu.matmul %7, %9, %cst_12 {dimension_numbers = #tpu.dot_dimension_numbers<[1], [0], [0], [1], [0, 0, 1, 1], [], []>} : vector<34x64xf32>, vector<64x128xf32>, vector<34x128xf32> -> vector<34x128xf32>
    %11 = arith.addf %6, %10 : vector<34x128xf32>
    %c1_13 = arith.constant 1 : index
    %c0_14 = arith.constant 0 : index
    %12 = vector.load %arg9[%c1_13, %c0_14] : memref<36x64xf32, #tpu.memory_space<vmem>>, vector<34x64xf32>
    %c1_15 = arith.constant 1 : index
    %c0_16 = arith.constant 0 : index
    %c0_17 = arith.constant 0 : index
    %13 = vector.load %arg2[%c1_15, %c0_16, %c0_17] : memref<3x64x128xf32, #tpu.memory_space<vmem>>, vector<1x64x128xf32>
    %14 = vector.shape_cast %13 : vector<1x64x128xf32> to vector<64x128xf32>
    %cst_18 = arith.constant dense<0.000000e+00> : vector<34x128xf32>
    %15 = tpu.matmul %12, %14, %cst_18 {dimension_numbers = #tpu.dot_dimension_numbers<[1], [0], [0], [1], [0, 0, 1, 1], [], []>} : vector<34x64xf32>, vector<64x128xf32>, vector<34x128xf32> -> vector<34x128xf32>
    %16 = arith.addf %11, %15 : vector<34x128xf32>
    %c2 = arith.constant 2 : index
    %c0_19 = arith.constant 0 : index
    %17 = vector.load %arg9[%c2, %c0_19] : memref<36x64xf32, #tpu.memory_space<vmem>>, vector<34x64xf32>
    %c2_20 = arith.constant 2 : index
    %c0_21 = arith.constant 0 : index
    %c0_22 = arith.constant 0 : index
    %18 = vector.load %arg2[%c2_20, %c0_21, %c0_22] : memref<3x64x128xf32, #tpu.memory_space<vmem>>, vector<1x64x128xf32>
    %19 = vector.shape_cast %18 : vector<1x64x128xf32> to vector<64x128xf32>
    %cst_23 = arith.constant dense<0.000000e+00> : vector<34x128xf32>
    %20 = tpu.matmul %17, %19, %cst_23 {dimension_numbers = #tpu.dot_dimension_numbers<[1], [0], [0], [1], [0, 0, 1, 1], [], []>} : vector<34x64xf32>, vector<64x128xf32>, vector<34x128xf32> -> vector<34x128xf32>
    %21 = arith.addf %16, %20 : vector<34x128xf32>
    %c0_24 = arith.constant 0 : index
    %c0_25 = arith.constant 0 : index
    %22 = vector.load %arg3[%c0_24, %c0_25] : memref<1x128xf32, #tpu.memory_space<vmem>>, vector<1x128xf32>
    %23 = vector.broadcast %22 : vector<1x128xf32> to vector<34x128xf32>
    %24 = arith.mulf %21, %23 : vector<34x128xf32>
    %c0_26 = arith.constant 0 : index
    %c0_27 = arith.constant 0 : index
    %25 = vector.load %arg4[%c0_26, %c0_27] : memref<1x128xf32, #tpu.memory_space<vmem>>, vector<1x128xf32>
    %26 = vector.broadcast %25 : vector<1x128xf32> to vector<34x128xf32>
    %27 = arith.addf %24, %26 : vector<34x128xf32>
    %cst_28 = arith.constant 0.000000e+00 : f32
    %28 = vector.broadcast %cst_28 : f32 to vector<34x128xf32>
    %29 = arith.maximumf %27, %28 : vector<34x128xf32>
    %cst_29 = arith.constant 0.000000e+00 : f32
    %30 = vector.broadcast %cst_29 : f32 to vector<36x128xf32>
    %c0_30 = arith.constant 0 : index
    %c0_31 = arith.constant 0 : index
    %31 = vector.load %arg10[%c0_30, %c0_31] : memref<36x128xf32, #tpu.memory_space<vmem>>, vector<36x128xf32>
    tpu.vector_store %arg10[%c0_30, %c0_31], %30 {strides = array<i32>} : memref<36x128xf32, #tpu.memory_space<vmem>>, vector<36x128xf32>,
    %32 = vector.extract_strided_slice %29 {offsets = [0, 0], sizes = [16, 128], strides = [1, 1]} : vector<34x128xf32> to vector<16x128xf32>
    %c1_32 = arith.constant 1 : index
    %c0_33 = arith.constant 0 : index
    %33 = vector.load %arg10[%c1_32, %c0_33] : memref<36x128xf32, #tpu.memory_space<vmem>>, vector<16x128xf32>
    tpu.vector_store %arg10[%c1_32, %c0_33], %32 {strides = array<i32>} : memref<36x128xf32, #tpu.memory_space<vmem>>, vector<16x128xf32>,
    %34 = vector.extract_strided_slice %29 {offsets = [18, 0], sizes = [16, 128], strides = [1, 1]} : vector<34x128xf32> to vector<16x128xf32>
    %c19_34 = arith.constant 19 : index
    %c0_35 = arith.constant 0 : index
    %35 = vector.load %arg10[%c19_34, %c0_35] : memref<36x128xf32, #tpu.memory_space<vmem>>, vector<16x128xf32>
    tpu.vector_store %arg10[%c19_34, %c0_35], %34 {strides = array<i32>} : memref<36x128xf32, #tpu.memory_space<vmem>>, vector<16x128xf32>,
    %cst_36 = arith.constant 0.000000e+00 : f32
    %36 = vector.broadcast %cst_36 : f32 to vector<34x128xf32>
    %c0_37 = arith.constant 0 : index
    %c0_38 = arith.constant 0 : index
    %37 = vector.load %arg10[%c0_37, %c0_38] : memref<36x128xf32, #tpu.memory_space<vmem>>, vector<34x128xf32>
    %c0_39 = arith.constant 0 : index
    %c0_40 = arith.constant 0 : index
    %c0_41 = arith.constant 0 : index
    %38 = vector.load %arg5[%c0_39, %c0_40, %c0_41] : memref<3x128x128xf32, #tpu.memory_space<vmem>>, vector<1x128x128xf32>
    %39 = vector.shape_cast %38 : vector<1x128x128xf32> to vector<128x128xf32>
    %cst_42 = arith.constant dense<0.000000e+00> : vector<34x128xf32>
    %40 = tpu.matmul %37, %39, %cst_42 {dimension_numbers = #tpu.dot_dimension_numbers<[1], [0], [0], [1], [0, 0, 1, 1], [], []>} : vector<34x128xf32>, vector<128x128xf32>, vector<34x128xf32> -> vector<34x128xf32>
    %41 = arith.addf %36, %40 : vector<34x128xf32>
    %c1_43 = arith.constant 1 : index
    %c0_44 = arith.constant 0 : index
    %42 = vector.load %arg10[%c1_43, %c0_44] : memref<36x128xf32, #tpu.memory_space<vmem>>, vector<34x128xf32>
    %c1_45 = arith.constant 1 : index
    %c0_46 = arith.constant 0 : index
    %c0_47 = arith.constant 0 : index
    %43 = vector.load %arg5[%c1_45, %c0_46, %c0_47] : memref<3x128x128xf32, #tpu.memory_space<vmem>>, vector<1x128x128xf32>
    %44 = vector.shape_cast %43 : vector<1x128x128xf32> to vector<128x128xf32>
    %cst_48 = arith.constant dense<0.000000e+00> : vector<34x128xf32>
    %45 = tpu.matmul %42, %44, %cst_48 {dimension_numbers = #tpu.dot_dimension_numbers<[1], [0], [0], [1], [0, 0, 1, 1], [], []>} : vector<34x128xf32>, vector<128x128xf32>, vector<34x128xf32> -> vector<34x128xf32>
    %46 = arith.addf %41, %45 : vector<34x128xf32>
    %c2_49 = arith.constant 2 : index
    %c0_50 = arith.constant 0 : index
    %47 = vector.load %arg10[%c2_49, %c0_50] : memref<36x128xf32, #tpu.memory_space<vmem>>, vector<34x128xf32>
    %c2_51 = arith.constant 2 : index
    %c0_52 = arith.constant 0 : index
    %c0_53 = arith.constant 0 : index
    %48 = vector.load %arg5[%c2_51, %c0_52, %c0_53] : memref<3x128x128xf32, #tpu.memory_space<vmem>>, vector<1x128x128xf32>
    %49 = vector.shape_cast %48 : vector<1x128x128xf32> to vector<128x128xf32>
    %cst_54 = arith.constant dense<0.000000e+00> : vector<34x128xf32>
    %50 = tpu.matmul %47, %49, %cst_54 {dimension_numbers = #tpu.dot_dimension_numbers<[1], [0], [0], [1], [0, 0, 1, 1], [], []>} : vector<34x128xf32>, vector<128x128xf32>, vector<34x128xf32> -> vector<34x128xf32>
    %51 = arith.addf %46, %50 : vector<34x128xf32>
    %c0_55 = arith.constant 0 : index
    %c0_56 = arith.constant 0 : index
    %52 = vector.load %arg6[%c0_55, %c0_56] : memref<1x128xf32, #tpu.memory_space<vmem>>, vector<1x128xf32>
    %53 = vector.broadcast %52 : vector<1x128xf32> to vector<34x128xf32>
    %54 = arith.mulf %51, %53 : vector<34x128xf32>
    %c0_57 = arith.constant 0 : index
    %c0_58 = arith.constant 0 : index
    %55 = vector.load %arg7[%c0_57, %c0_58] : memref<1x128xf32, #tpu.memory_space<vmem>>, vector<1x128xf32>
    %56 = vector.broadcast %55 : vector<1x128xf32> to vector<34x128xf32>
    %57 = arith.addf %54, %56 : vector<34x128xf32>
    %cst_59 = arith.constant 0.000000e+00 : f32
    %58 = vector.broadcast %cst_59 : f32 to vector<34x128xf32>
    %59 = arith.maximumf %57, %58 : vector<34x128xf32>
    %60 = vector.extract_strided_slice %59 {offsets = [0, 0], sizes = [16, 128], strides = [1, 1]} : vector<34x128xf32> to vector<16x128xf32>
    %c0_60 = arith.constant 0 : index
    %c0_61 = arith.constant 0 : index
    %61 = vector.load %arg8[%c0_60, %c0_61] : memref<32x128xf32, #tpu.memory_space<vmem>>, vector<16x128xf32>
    tpu.vector_store %arg8[%c0_60, %c0_61], %60 {strides = array<i32>} : memref<32x128xf32, #tpu.memory_space<vmem>>, vector<16x128xf32>,
    %62 = vector.extract_strided_slice %59 {offsets = [18, 0], sizes = [16, 128], strides = [1, 1]} : vector<34x128xf32> to vector<16x128xf32>
    %c16_62 = arith.constant 16 : index
    %c0_63 = arith.constant 0 : index
    %63 = vector.load %arg8[%c16_62, %c0_63] : memref<32x128xf32, #tpu.memory_space<vmem>>, vector<16x128xf32>
    tpu.vector_store %arg8[%c16_62, %c0_63], %62 {strides = array<i32>} : memref<32x128xf32, #tpu.memory_space<vmem>>, vector<16x128xf32>,
    return
  }
  func.func @transform_0(%arg0: i32) -> (i32, i32) {
    %c0_i32 = arith.constant 0 : i32
    %c0_i32_0 = arith.constant 0 : i32
    %c0_i32_1 = arith.constant 0 : i32
    return %c0_i32, %c0_i32_0 : i32, i32
  }
  func.func @transform_1(%arg0: i32) -> (i32, i32, i32) {
    %c0_i32 = arith.constant 0 : i32
    %c0_i32_0 = arith.constant 0 : i32
    %c0_i32_1 = arith.constant 0 : i32
    %c0_i32_2 = arith.constant 0 : i32
    return %c0_i32, %c0_i32_0, %c0_i32_1 : i32, i32, i32
  }
  func.func @transform_2(%arg0: i32) -> (i32, i32) {
    %c0_i32 = arith.constant 0 : i32
    %c0_i32_0 = arith.constant 0 : i32
    %c0_i32_1 = arith.constant 0 : i32
    return %c0_i32, %c0_i32_0 : i32, i32
  }
  func.func @transform_3(%arg0: i32) -> (i32, i32) {
    %c0_i32 = arith.constant 0 : i32
    %c0_i32_0 = arith.constant 0 : i32
    %c0_i32_1 = arith.constant 0 : i32
    return %c0_i32, %c0_i32_0 : i32, i32
  }
  func.func @transform_4(%arg0: i32) -> (i32, i32, i32) {
    %c0_i32 = arith.constant 0 : i32
    %c0_i32_0 = arith.constant 0 : i32
    %c0_i32_1 = arith.constant 0 : i32
    %c0_i32_2 = arith.constant 0 : i32
    return %c0_i32, %c0_i32_0, %c0_i32_1 : i32, i32, i32
  }
  func.func @transform_5(%arg0: i32) -> (i32, i32) {
    %c0_i32 = arith.constant 0 : i32
    %c0_i32_0 = arith.constant 0 : i32
    %c0_i32_1 = arith.constant 0 : i32
    return %c0_i32, %c0_i32_0 : i32, i32
  }
  func.func @transform_6(%arg0: i32) -> (i32, i32) {
    %c0_i32 = arith.constant 0 : i32
    %c0_i32_0 = arith.constant 0 : i32
    %c0_i32_1 = arith.constant 0 : i32
    return %c0_i32, %c0_i32_0 : i32, i32
  }
  func.func @transform_7(%arg0: i32) -> (i32, i32) {
    %c0_i32 = arith.constant 0 : i32
    %c0_i32_0 = arith.constant 0 : i32
    %c0_i32_1 = arith.constant 0 : i32
    return %c0_i32, %c0_i32_0 : i32, i32
  }
}

</mosaic_0001>

<bundles_post_ra>
// kernel: tile.18
= control target key start
LH: loop header
LB: loop body
LE: loop exit
PB: predicated region body
PF: predicated region fallthrough
CT: control target
= control target key end

     0   :  { %s28_s0 = inlined_call_operand.vmem [shape: f32[8], index: 0, kind: input, shape index: {}]   ;;  %s29_s1 = inlined_call_operand.vmem [shape: f32[16,8], index: 1, kind: output, shape index: {}]  }
   0x1   :  { %v4_v0 = vld [vmem:[%s28_s0] ss:$0 sm:$0xff] }
   0x2   :  { %5 = vst [vmem:[%s29_s1] sm:$0xff] %v4_v0  ;;  %8 = vst [vmem:[%s29_s1 + $0x8] sm:$0xff] %v4_v0 }

// kernel: tile.19
= control target key start
LH: loop header
LB: loop body
LE: loop exit
PB: predicated region body
PF: predicated region fallthrough
CT: control target
= control target key end

     0   :  { %s133_s10 = smov 120   ;;  %s134_s11 = smov 104   ;;  %vm3_vm0 = vcmask 64512   ;;  %vm9_vm1 = vcmask 1048512   ;;  %vm15_vm2 = vcmask 982912   ;;  %vm21_vm3 = vcmask 917312   ;;  %s209_s0 = inlined_call_operand.vmem [shape: f32[16,8], index: 0, kind: input, shape index: {}]   ;;  %s210_s1 = inlined_call_operand.vmem [shape: f32[1,128], index: 1, kind: output, shape index: {}]  }
   0x1   :  { %v103_v0 = vld [vmem:[%s209_s0 + $0xf] sm:$0x1]   ;;  %v105_v1 = vld [vmem:[%s209_s0 + $0xd] sm:$0x1]   ;;  %v104_v2 = vld [vmem:[%s209_s0 + $0xe] sm:$0x1]  }
   0x2   :  { %7 = vrot.lane.b32.xlu0 %v103_v0, %s133_s10  ;;  %19 = vrot.lane.b32.xlu1 %v105_v1, %s134_s11  ;;  %v106_v3 = vld [vmem:[%s209_s0 + $0xc] sm:$0x1]   ;;  %s135_s16 = smov 112   ;;  %s136_s17 = smov 96   ;;  %v107_v4 = vld [vmem:[%s209_s0 + $0xb] sm:$0x1]  }
   0x3   :  { %v108_v5 = vld [vmem:[%s209_s0 + $0xa] sm:$0x1]   ;;  %v2_v6 = vld [vmem:[%s209_s0] sm:$0x1]   ;;  %s137_s24 = smov 88   ;;  %s138_s25 = smov 80  }
   0x4   :  { %4 = vst.msk [vmem:[#allocation0] sm:$0x1] %vm3_vm0, %v2_v6   ;;  %v109_v7 = vld [vmem:[%s209_s0 + $0x9] sm:$0x1]   ;;  %v110_v8 = vld [vmem:[%s209_s0 + $0x8] sm:$0x1]  }
   0x5   :  { %s139_s30 = smov 72   ;;  %s140_s2 = smov 64   ;;  %v111_v9 = vld [vmem:[%s209_s0 + $0x7] sm:$0x1]   ;;  %v112_v10 = vld [vmem:[%s209_s0 + $0x6] sm:$0x1]  }
   0x6   :  { %13 = vrot.lane.b32.xlu0 %v104_v2, %s135_s16  ;;  %25 = vrot.lane.b32.xlu1 %v106_v3, %s136_s17  ;;  %s141_s7 = smov 56   ;;  %s142_s8 = smov 48   ;;  %v113_v11 = vld [vmem:[%s209_s0 + $0x5] sm:$0x1]   ;;  %v114_v12 = vld [vmem:[%s209_s0 + $0x4] sm:$0x1]  }
   0x7   :  { %s143_s13 = smov 40   ;;  %s144_s14 = smov 32   ;;  %v115_v13 = vld [vmem:[%s209_s0 + $0x3] sm:$0x1]   ;;  %v116_v14 = vld [vmem:[%s209_s0 + $0x2] sm:$0x1]  }
   0x8   :  { %s145_s19 = smov 24   ;;  %s146_s20 = smov 16   ;;  %v117_v15 = vld [vmem:[%s209_s0 + $0x1] sm:$0x1]   ;;  %vm27_vm4 = vcmask 851712   ;;  %vm33_vm5 = vcmask 786112  }
   0x9   :  { %s147_s0 = smov 8   ;;  %vm39_vm6 = vcmask 720512   ;;  %vm45_vm7 = vcmask 654912   ;;  %vm51_vm8 = vcmask 589312   ;;  %vm57_vm9 = vcmask 523712  }
   0xa   :  { %31 = vrot.lane.b32.xlu0 %v107_v4, %s137_s24  ;;  %37 = vrot.lane.b32.xlu1 %v108_v5, %s138_s25  ;;  %vm63_vm10 = vcmask 458112   ;;  %vm69_vm11 = vcmask 392512   ;;  %vm75_vm12 = vcmask 326912   ;;  %vm81_vm13 = vcmask 261312  }
   0xb   :  { %vm87_vm14 = vcmask 195712   ;;  %vm93_vm15 = vcmask 130112  }
   0xe   :  { %43 = vrot.lane.b32.xlu0 %v109_v7, %s139_s30  ;;  %49 = vrot.lane.b32.xlu1 %v110_v8, %s140_s2 }
  0x12   :  { %55 = vrot.lane.b32.xlu0 %v111_v9, %s141_s7  ;;  %61 = vrot.lane.b32.xlu1 %v112_v10, %s142_s8 }
  0x16   :  { %67 = vrot.lane.b32.xlu0 %v113_v11, %s143_s13  ;;  %73 = vrot.lane.b32.xlu1 %v114_v12, %s144_s14 }
  0x1a   :  { %79 = vrot.lane.b32.xlu0 %v115_v13, %s145_s19  ;;  %85 = vrot.lane.b32.xlu1 %v116_v14, %s146_s20 }
  0x1e   :  { %91 = vrot.lane.b32.xlu0 %v117_v15, %s147_s0 }
  0x74   :  { %v8_v16 = vpop.permute.xlu0 %7   ;;  %v20_v17 = vpop.permute.xlu1 %19  }
  0x75   :  { %10 = vst.msk [vmem:[#allocation0] sm:$0x1] %vm9_vm1, %v8_v16  }
  0x78   :  { %v14_v18 = vpop.permute.xlu0 %13   ;;  %v26_v19 = vpop.permute.xlu1 %25  }
  0x79   :  { %16 = vst.msk [vmem:[#allocation0] sm:$0x1] %vm15_vm2, %v14_v18  }
  0x7a   :  { %22 = vst.msk [vmem:[#allocation0] sm:$0x1] %vm21_vm3, %v20_v17  }
  0x7b   :  { %28 = vst.msk [vmem:[#allocation0] sm:$0x1] %vm27_vm4, %v26_v19  }
  0x7c   :  { %v32_v20 = vpop.permute.xlu0 %31   ;;  %v38_v21 = vpop.permute.xlu1 %37  }
  0x7d   :  { %34 = vst.msk [vmem:[#allocation0] sm:$0x1] %vm33_vm5, %v32_v20  }
  0x7e   :  { %40 = vst.msk [vmem:[#allocation0] sm:$0x1] %vm39_vm6, %v38_v21  }
  0x80   :  { %v44_v22 = vpop.permute.xlu0 %43   ;;  %v50_v23 = vpop.permute.xlu1 %49  }
  0x81   :  { %46 = vst.msk [vmem:[#allocation0] sm:$0x1] %vm45_vm7, %v44_v22  }
  0x82   :  { %52 = vst.msk [vmem:[#allocation0] sm:$0x1] %vm51_vm8, %v50_v23  }
  0x84   :  { %v56_v24 = vpop.permute.xlu0 %55   ;;  %v62_v25 = vpop.permute.xlu1 %61  }
  0x85   :  { %58 = vst.msk [vmem:[#allocation0] sm:$0x1] %vm57_vm9, %v56_v24  }
  0x86   :  { %64 = vst.msk [vmem:[#allocation0] sm:$0x1] %vm63_vm10, %v62_v25  }
  0x88   :  { %v68_v26 = vpop.permute.xlu0 %67   ;;  %v74_v27 = vpop.permute.xlu1 %73  }
  0x89   :  { %70 = vst.msk [vmem:[#allocation0] sm:$0x1] %vm69_vm11, %v68_v26  }
  0x8a   :  { %76 = vst.msk [vmem:[#allocation0] sm:$0x1] %vm75_vm12, %v74_v27  }
  0x8c   :  { %v80_v28 = vpop.permute.xlu0 %79   ;;  %v86_v29 = vpop.permute.xlu1 %85  }
  0x8d   :  { %82 = vst.msk [vmem:[#allocation0] sm:$0x1] %vm81_vm13, %v80_v28  }
  0x8e   :  { %88 = vst.msk [vmem:[#allocation0] sm:$0x1] %vm87_vm14, %v86_v29  }
  0x90   :  { %v92_v30 = vpop.permute.xlu0 %91  }
  0x91   :  { %94 = vst.msk [vmem:[#allocation0] sm:$0x1] %vm93_vm15, %v92_v30  }
  0x98   :  { %v99_v31 = vld [vmem:[#allocation0] sm:$0x1] }
  0x99   :  { %102 = vst [vmem:[%s210_s1] sm:$0x1] %v99_v31 }

// kernel: double_conv_apply.1
= control target key start
LH: loop header
LB: loop body
LE: loop exit
PB: predicated region body
PF: predicated region fallthrough
CT: control target
= control target key end

     0   :  { %vm26_vm0 = vcmask 523264   ;;  %vm31_vm1 = vcmask 519168   ;;  %v1224_v0 = vmov 0.0   ;;  %vm1225_vm2 = vmmov 0   ;;  %s1687_s1 = inlined_call_operand.vmem [shape: f32[3,64,128], index: 1, kind: input, shape index: {}]   ;;  %s1688_s0 = inlined_call_operand.vmem [shape: f32[32,64], index: 0, kind: input, shape index: {}]   ;;  %s1689_s4 = inlined_call_operand.vmem [shape: f32[3,128,128], index: 4, kind: input, shape index: {}]   ;;  %s1690_s2 = inlined_call_operand.vmem [shape: f32[1,128], index: 2, kind: input, shape index: {}]   ;;  %s1691_s3 = inlined_call_operand.vmem [shape: f32[1,128], index: 3, kind: input, shape index: {}]   ;;  %s1692_s5 = inlined_call_operand.vmem [shape: f32[1,128], index: 5, kind: input, shape index: {}]   ;;  %s1693_s6 = inlined_call_operand.vmem [shape: f32[1,128], index: 6, kind: input, shape index: {}]   ;;  %s1694_s7 = inlined_call_operand.vmem [shape: f32[32,128], index: 7, kind: output, shape index: {}]  }
   0x1   :  { %988 = vmatprep.subr.mxu0 %v1224_v0  ;;  %431 = vst [vmem:[#allocation3] sm:$0xff] %v1224_v0  ;;  %432 = vst [vmem:[#allocation3 + $0x8] sm:$0xff] %v1224_v0  ;;  %v826_v1 = vld [vmem:[%s1687_s1 + $0x78] sm:$0xff]  ;;  %1019 = vmatprep.subr.mxu1 %v1224_v0  ;;  %v825_v3 = vld [vmem:[%s1687_s1 + $0x70] sm:$0xff] }
   0x2   :  { %433 = vst [vmem:[#allocation3 + $0x10] sm:$0xff] %v1224_v0  ;;  %434 = vst [vmem:[#allocation3 + $0x18] sm:$0xff] %v1224_v0  ;;  %v53_v2 = vld [vmem:[%s1687_s1 + $0x38] sm:$0xff]  ;;  %989 = vmatpush3.msra.mxu0 %v826_v1  ;;  %v52_v4 = vld [vmem:[%s1687_s1 + $0x30] sm:$0xff]  ;;  %1004 = vmatprep.mubr.msk.f32.mxu0 %vm1225_vm2, %v1224_v0 }
   0x3   :  { %435 = vst [vmem:[#allocation3 + $0x20] sm:$0xf] %v1224_v0  ;;  %27 = vst.msk [vmem:[#allocation2] sm:$0xff] %vm26_vm0, %v1224_v0  ;;  %1020 = vmatpush3.msra.mxu1 %v53_v2  ;;  %990 = vmatprep.subr.mxu0 %v1224_v0  ;;  %v824_v5 = vld [vmem:[%s1687_s1 + $0x68] sm:$0xff]  ;;  %v823_v7 = vld [vmem:[%s1687_s1 + $0x60] sm:$0xff] }
   0x4   :  { %28 = vst.msk [vmem:[#allocation2 + $0x8] sm:$0xff] %vm26_vm0, %v1224_v0  ;;  %29 = vst.msk [vmem:[#allocation2 + $0x10] sm:$0xff] %vm26_vm0, %v1224_v0  ;;  %1021 = vmatprep.subr.mxu1 %v1224_v0  ;;  %v51_v6 = vld [vmem:[%s1687_s1 + $0x28] sm:$0xff]  ;;  %991 = vmatpush3.msra.mxu0 %v825_v3  ;;  %v50_v8 = vld [vmem:[%s1687_s1 + $0x20] sm:$0xff] }
   0x5   :  { %30 = vst.msk [vmem:[#allocation2 + $0x18] sm:$0xff] %vm26_vm0, %v1224_v0  ;;  %1022 = vmatpush3.msra.mxu1 %v52_v4  ;;  %992 = vmatprep.subr.mxu0 %v1224_v0  ;;  %v33_v9 = vld [vmem:[%s1688_s0] sm:$0xff]  ;;  %v822_v10 = vld [vmem:[%s1687_s1 + $0x58] sm:$0xff]  ;;  %v34_v12 = vld [vmem:[%s1688_s0 + $0x8] sm:$0xff] }
   0x6   :  { %32 = vst.msk [vmem:[#allocation2 + $0x20] sm:$0xf] %vm31_vm1, %v1224_v0  ;;  %1023 = vmatprep.subr.mxu1 %v1224_v0  ;;  %993 = vmatpush3.msra.mxu0 %v824_v5  ;;  %v49_v11 = vld [vmem:[%s1687_s1 + $0x18] sm:$0xff]  ;;  %v37_v13 = vld [vmem:[%s1688_s0 + $0x10] sm:$0xff]  ;;  %v820_v17 = vld [vmem:[%s1687_s1 + $0x48] sm:$0xff] }
   0x7   :  { %1024 = vmatpush3.msra.mxu1 %v51_v6  ;;  %994 = vmatprep.subr.mxu0 %v1224_v0  ;;  %35 = vst.msk [vmem:[#allocation2 + $0x1] sm:$0xff] %vm26_vm0, %v33_v9  ;;  %36 = vst.msk [vmem:[#allocation2 + $0x9] sm:$0xff] %vm26_vm0, %v34_v12  ;;  %v821_v14 = vld [vmem:[%s1687_s1 + $0x50] sm:$0xff]  ;;  %v38_v16 = vld [vmem:[%s1688_s0 + $0x18] sm:$0xff] }
   0x8   :  { %1025 = vmatprep.subr.mxu1 %v1224_v0  ;;  %995 = vmatpush3.msra.mxu0 %v823_v7  ;;  %v48_v15 = vld [vmem:[%s1687_s1 + $0x10] sm:$0xff]  ;;  %39 = vst.msk [vmem:[#allocation2 + $0x13] sm:$0xff] %vm26_vm0, %v37_v13  ;;  %40 = vst.msk [vmem:[#allocation2 + $0x1b] sm:$0xff] %vm26_vm0, %v38_v16  ;;  %v47_v18 = vld [vmem:[%s1687_s1 + $0x8] sm:$0xff] }
   0x9   :  { %1026 = vmatpush3.msra.mxu1 %v50_v8  ;;  %996 = vmatprep.subr.mxu0 %v1224_v0  ;;  %v819_v19 = vld [vmem:[%s1687_s1 + $0x40] sm:$0xff]  ;;  %v844_v23 = vld [vmem:[%s1687_s1 + $0xb8] sm:$0xff]  ;;  %v843_v25 = vld [vmem:[%s1687_s1 + $0xb0] sm:$0xff] }
   0xa   :  { %1027 = vmatprep.subr.mxu1 %v1224_v0  ;;  %997 = vmatpush3.msra.mxu0 %v822_v10  ;;  %v46_v21 = vld [vmem:[%s1687_s1] sm:$0xff]  ;;  %v842_v27 = vld [vmem:[%s1687_s1 + $0xa8] sm:$0xff]  ;;  %v840_v31 = vld [vmem:[%s1687_s1 + $0x98] sm:$0xff] }
   0xb   :  { %1028 = vmatpush3.msra.mxu1 %v49_v11  ;;  %998 = vmatprep.subr.mxu0 %v1224_v0  ;;  %v841_v29 = vld [vmem:[%s1687_s1 + $0xa0] sm:$0xff]  ;;  %v839_v33 = vld [vmem:[%s1687_s1 + $0x90] sm:$0xff]  ;;  %v838_v35 = vld [vmem:[%s1687_s1 + $0x88] sm:$0xff] }
   0xc   :  { %1029 = vmatprep.subr.mxu1 %v1224_v0  ;;  %999 = vmatpush3.msra.mxu0 %v821_v14  ;;  %v837_v37 = vld [vmem:[%s1687_s1 + $0x80] sm:$0xff]  ;;  %v867_v44 = vld [vmem:[%s1689_s4 + $0xf8] sm:$0xff]  ;;  %v866_v45 = vld [vmem:[%s1689_s4 + $0xf0] sm:$0xff] }
   0xd   :  { %1030 = vmatpush3.msra.mxu1 %v48_v15  ;;  %1000 = vmatprep.subr.mxu0 %v1224_v0  ;;  %v865_v46 = vld [vmem:[%s1689_s4 + $0xe8] sm:$0xff]  ;;  %v864_v47 = vld [vmem:[%s1689_s4 + $0xe0] sm:$0xff]  ;;  %v863_v48 = vld [vmem:[%s1689_s4 + $0xd8] sm:$0xff] }
   0xe   :  { %1031 = vmatprep.subr.mxu1 %v1224_v0  ;;  %1001 = vmatpush3.msra.mxu0 %v820_v17  ;;  %v54_v20 = vld [vmem:[#allocation2 + $0x1] sm:$0xff]  ;;  %v55_v24 = vld [vmem:[#allocation2 + $0x9] sm:$0xff]  ;;  %v461_v49 = vld [vmem:[%s1689_s4 + $0x78] sm:$0xff] }
   0xf   :  { %1032 = vmatpush3.msra.mxu1 %v47_v18  ;;  %1002 = vmatprep.subr.mxu0 %v1224_v0  ;;  %v41_v22 = vld [vmem:[#allocation2] sm:$0xff]  ;;  %v42_v26 = vld [vmem:[#allocation2 + $0x8] sm:$0xff]  ;;  %v56_v28 = vld [vmem:[#allocation2 + $0x11] sm:$0xff] }
  0x10   :  { %1003 = vmatpush3.msra.mxu0 %v819_v19  ;;  %1033 = vmatprep.subr.mxu1 %v1224_v0  ;;  %v43_v30 = vld [vmem:[#allocation2 + $0x10] sm:$0xff]  ;;  %v57_v32 = vld [vmem:[#allocation2 + $0x19] sm:$0xff]  ;;  %v58_v36 = vld [vmem:[#allocation2 + $0x21] sm:$0x3] }
  0x11   :  { %1005 = vmatmul.mubr.msk.f32.vlgmr.msra.gmra.mxu0 %vm26_vm0, %v54_v20  ;;  %1034 = vmatpush3.msra.mxu1 %v46_v21  ;;  %v44_v34 = vld [vmem:[#allocation2 + $0x18] sm:$0xff]  ;;  %v45_v38 = vld [vmem:[#allocation2 + $0x20] sm:$0x3]  ;;  %v278_v39 = vld [vmem:[#allocation2 + $0x2] sm:$0xff] }
  0x12   :  { %1035 = vmatprep.mubr.msk.f32.mxu1 %vm1225_vm2, %v1224_v0  ;;  %1050 = vmatprep.subr.mxu0 %v1224_v0  ;;  %v279_v40 = vld [vmem:[#allocation2 + $0xa] sm:$0xff]  ;;  %v280_v41 = vld [vmem:[#allocation2 + $0x12] sm:$0xff]  ;;  %v281_v42 = vld [vmem:[#allocation2 + $0x1a] sm:$0xff] }
  0x13   :  { %1036 = vmatmul.mubr.msk.f32.vlgmr.msra.gmra.mxu1 %vm26_vm0, %v41_v22  ;;  %1051 = vmatpush3.msra.mxu0 %v844_v23  ;;  %v282_v43 = vld [vmem:[#allocation2 + $0x22] sm:$0x3]  ;;  %v460_v50 = vld [vmem:[%s1689_s4 + $0x70] sm:$0xff]  ;;  %v861_v52 = vld [vmem:[%s1689_s4 + $0xc8] sm:$0xff] }
  0x14   :  { %1007 = vmatprep.mubr.msk.f32.mxu0 %vm1225_vm2, %v1224_v0  ;;  %1052 = vmatprep.subr.mxu0 %v1224_v0  ;;  %v862_v51 = vld [vmem:[%s1689_s4 + $0xd0] sm:$0xff]  ;;  %v459_v53 = vld [vmem:[%s1689_s4 + $0x68] sm:$0xff]  ;;  %v458_v54 = vld [vmem:[%s1689_s4 + $0x60] sm:$0xff] }
  0x15   :  { %1008 = vmatmul.mubr.msk.f32.gmra.mxu0 %vm26_vm0, %v55_v24  ;;  %1038 = vmatprep.mubr.msk.f32.mxu1 %vm1225_vm2, %v1224_v0  ;;  %v860_v55 = vld [vmem:[%s1689_s4 + $0xc0] sm:$0xff]  ;;  %v859_v56 = vld [vmem:[%s1689_s4 + $0xb8] sm:$0xff]  ;;  %v456_v58 = vld [vmem:[%s1689_s4 + $0x50] sm:$0xff] }
  0x16   :  { %1053 = vmatpush3.msra.mxu0 %v843_v25  ;;  %1010 = vmatprep.mubr.msk.f32.mxu0 %vm1225_vm2, %v1224_v0  ;;  %v457_v57 = vld [vmem:[%s1689_s4 + $0x58] sm:$0xff]  ;;  %v858_v59 = vld [vmem:[%s1689_s4 + $0xb0] sm:$0xff]  ;;  %v857_v60 = vld [vmem:[%s1689_s4 + $0xa8] sm:$0xff] }
  0x17   :  { %1039 = vmatmul.mubr.msk.f32.gmra.mxu1 %vm26_vm0, %v42_v26  ;;  %1054 = vmatprep.subr.mxu0 %v1224_v0  ;;  %v455_v61 = vld [vmem:[%s1689_s4 + $0x48] sm:$0xff]  ;;  %v856_v62 = vld [vmem:[%s1689_s4 + $0xa0] sm:$0xff]  ;;  %v855_v1 = vld [vmem:[%s1689_s4 + $0x98] sm:$0xff] }
  0x18   :  { %1055 = vmatpush3.msra.mxu0 %v842_v27  ;;  %1041 = vmatprep.mubr.msk.f32.mxu1 %vm1225_vm2, %v1224_v0  ;;  %v454_v63 = vld [vmem:[%s1689_s4 + $0x40] sm:$0xff]  ;;  %v453_v2 = vld [vmem:[%s1689_s4 + $0x38] sm:$0xff]  ;;  %v854_v3 = vld [vmem:[%s1689_s4 + $0x90] sm:$0xff] }
  0x19   :  { %1011 = vmatmul.mubr.msk.f32.gmra.mxu0 %vm26_vm0, %v56_v28  ;;  %1056 = vmatprep.subr.mxu0 %v1224_v0  ;;  %v452_v4 = vld [vmem:[%s1689_s4 + $0x30] sm:$0xff]  ;;  %v853_v5 = vld [vmem:[%s1689_s4 + $0x88] sm:$0xff]  ;;  %v852_v7 = vld [vmem:[%s1689_s4 + $0x80] sm:$0xff] }
  0x1a   :  { %1057 = vmatpush3.msra.mxu0 %v841_v29  ;;  %1013 = vmatprep.mubr.msk.f32.mxu0 %vm1225_vm2, %v1224_v0  ;;  %v451_v6 = vld [vmem:[%s1689_s4 + $0x28] sm:$0xff]  ;;  %v450_v8 = vld [vmem:[%s1689_s4 + $0x20] sm:$0xff]  ;;  %v449_v9 = vld [vmem:[%s1689_s4 + $0x18] sm:$0xff] }
  0x1b   :  { %1042 = vmatmul.mubr.msk.f32.gmra.mxu1 %vm26_vm0, %v43_v30  ;;  %1058 = vmatprep.subr.mxu0 %v1224_v0  ;;  %v448_v10 = vld [vmem:[%s1689_s4 + $0x10] sm:$0xff]  ;;  %v447_v11 = vld [vmem:[%s1689_s4 + $0x8] sm:$0xff]  ;;  %v446_v12 = vld [vmem:[%s1689_s4] sm:$0xff] }
  0x1c   :  { %1059 = vmatpush3.msra.mxu0 %v840_v31  ;;  %1044 = vmatprep.mubr.msk.f32.mxu1 %vm1225_vm2, %v1224_v0 }
  0x1d   :  { %1014 = vmatmul.mubr.msk.f32.gmra.mxu0 %vm26_vm0, %v57_v32  ;;  %1060 = vmatprep.subr.mxu0 %v1224_v0 }
  0x1e   :  { %1061 = vmatpush3.msra.mxu0 %v839_v33  ;;  %1016 = vmatprep.mubr.msk.f32.mxu0 %vm1225_vm2, %v1224_v0 }
  0x1f   :  { %1045 = vmatmul.mubr.msk.f32.gmra.mxu1 %vm26_vm0, %v44_v34  ;;  %1062 = vmatprep.subr.mxu0 %v1224_v0  ;;  %v850_v34 = vld [vmem:[%s1690_s2] ss:$0 sm:$0xff] }
  0x20   :  { %1047 = vmatprep.mubr.msk.f32.mxu1 %vm1225_vm2, %v1224_v0  ;;  %1063 = vmatpush3.msra.mxu0 %v838_v35 }
  0x21   :  { %1017 = vmatmul.mubr.msk.f32.gmra.mxu0 %vm26_vm0, %v58_v36  ;;  %1064 = vmatprep.subr.mxu0 %v1224_v0 }
  0x22   :  { %1065 = vmatpush3.msra.mxu0 %v837_v37  ;;  %1066 = vmatprep.mubr.msk.f32.mxu0 %vm1225_vm2, %v1224_v0  ;;  %v851_v37 = vld [vmem:[%s1691_s3] ss:$0 sm:$0xff] }
  0x23   :  { %1048 = vmatmul.mubr.msk.f32.gmra.mxu1 %vm26_vm0, %v45_v38  ;;  %1081 = vmatprep.subr.mxu1 %v1224_v0 }
  0x24   :  { %1128 = vmatprep.subr.mxu0 %v1224_v0  ;;  %1113 = vmatprep.mubr.msk.f32.mxu1 %vm1225_vm2, %v1224_v0 }
  0x25   :  { %1067 = vmatmul.mubr.msk.f32.vlgmr.msra.gmra.mxu0 %vm26_vm0, %v278_v39  ;;  %1082 = vmatpush3.msra.mxu1 %v867_v44 }
  0x26   :  { %1069 = vmatprep.mubr.msk.f32.mxu0 %vm1225_vm2, %v1224_v0  ;;  %1083 = vmatprep.subr.mxu1 %v1224_v0 }
  0x27   :  { %1084 = vmatpush3.msra.mxu1 %v866_v45  ;;  %1129 = vmatpush3.msra.mxu0 %v461_v49 }
  0x28   :  { %1085 = vmatprep.subr.mxu1 %v1224_v0  ;;  %1130 = vmatprep.subr.mxu0 %v1224_v0 }
  0x29   :  { %1070 = vmatmul.mubr.msk.f32.gmra.mxu0 %vm26_vm0, %v279_v40  ;;  %1086 = vmatpush3.msra.mxu1 %v865_v46 }
  0x2a   :  { %1072 = vmatprep.mubr.msk.f32.mxu0 %vm1225_vm2, %v1224_v0  ;;  %1087 = vmatprep.subr.mxu1 %v1224_v0 }
  0x2b   :  { %1088 = vmatpush3.msra.mxu1 %v864_v47  ;;  %1131 = vmatpush3.msra.mxu0 %v460_v50 }
  0x2c   :  { %1089 = vmatprep.subr.mxu1 %v1224_v0  ;;  %1132 = vmatprep.subr.mxu0 %v1224_v0 }
  0x2d   :  { %1073 = vmatmul.mubr.msk.f32.gmra.mxu0 %vm26_vm0, %v280_v41  ;;  %1090 = vmatpush3.msra.mxu1 %v863_v48  ;;  %v883_v48 = vld [vmem:[%s1689_s4 + $0x178] sm:$0xff] }
  0x2e   :  { %1075 = vmatprep.mubr.msk.f32.mxu0 %vm1225_vm2, %v1224_v0  ;;  %1091 = vmatprep.subr.mxu1 %v1224_v0 }
  0x2f   :  { %1092 = vmatpush3.msra.mxu1 %v862_v51  ;;  %1133 = vmatpush3.msra.mxu0 %v459_v53 }
  0x30   :  { %1093 = vmatprep.subr.mxu1 %v1224_v0  ;;  %1134 = vmatprep.subr.mxu0 %v1224_v0 }
  0x31   :  { %1076 = vmatmul.mubr.msk.f32.gmra.mxu0 %vm26_vm0, %v281_v42  ;;  %1094 = vmatpush3.msra.mxu1 %v861_v52  ;;  %v882_v52 = vld [vmem:[%s1689_s4 + $0x170] sm:$0xff] }
  0x32   :  { %1078 = vmatprep.mubr.msk.f32.mxu0 %vm1225_vm2, %v1224_v0  ;;  %1095 = vmatprep.subr.mxu1 %v1224_v0 }
  0x33   :  { %1096 = vmatpush3.msra.mxu1 %v860_v55  ;;  %1135 = vmatpush3.msra.mxu0 %v458_v54 }
  0x34   :  { %1097 = vmatprep.subr.mxu1 %v1224_v0  ;;  %1136 = vmatprep.subr.mxu0 %v1224_v0 }
  0x35   :  { %1079 = vmatmul.mubr.msk.f32.gmra.mxu0 %vm26_vm0, %v282_v43  ;;  %1098 = vmatpush3.msra.mxu1 %v859_v56 }
  0x36   :  { %1160 = vmatprep.mubr.msk.f32.mxu0 %vm1225_vm2, %v1224_v0  ;;  %1137 = vmatpush3.msra.mxu0 %v457_v57  ;;  %v881_v57 = vld [vmem:[%s1689_s4 + $0x168] sm:$0xff] }
  0x37   :  { %1099 = vmatprep.subr.mxu1 %v1224_v0  ;;  %1138 = vmatprep.subr.mxu0 %v1224_v0 }
  0x38   :  { %1100 = vmatpush3.msra.mxu1 %v858_v59  ;;  %1139 = vmatpush3.msra.mxu0 %v456_v58 }
  0x39   :  { %1101 = vmatprep.subr.mxu1 %v1224_v0  ;;  %1140 = vmatprep.subr.mxu0 %v1224_v0 }
  0x3a   :  { %1102 = vmatpush3.msra.mxu1 %v857_v60  ;;  %1141 = vmatpush3.msra.mxu0 %v455_v61  ;;  %v880_v61 = vld [vmem:[%s1689_s4 + $0x160] sm:$0xff] }
  0x3b   :  { %1103 = vmatprep.subr.mxu1 %v1224_v0  ;;  %1142 = vmatprep.subr.mxu0 %v1224_v0 }
  0x3c   :  { %1104 = vmatpush3.msra.mxu1 %v856_v62  ;;  %1143 = vmatpush3.msra.mxu0 %v454_v63 }
  0x3d   :  { %1105 = vmatprep.subr.mxu1 %v1224_v0  ;;  %1144 = vmatprep.subr.mxu0 %v1224_v0 }
  0x3e   :  { %1106 = vmatpush3.msra.mxu1 %v855_v1  ;;  %1145 = vmatpush3.msra.mxu0 %v453_v2 }
  0x3f   :  { %1107 = vmatprep.subr.mxu1 %v1224_v0  ;;  %1146 = vmatprep.subr.mxu0 %v1224_v0 }
  0x40   :  { %1108 = vmatpush3.msra.mxu1 %v854_v3  ;;  %1147 = vmatpush3.msra.mxu0 %v452_v4  ;;  %v879_v3 = vld [vmem:[%s1689_s4 + $0x158] sm:$0xff] }
  0x41   :  { %1109 = vmatprep.subr.mxu1 %v1224_v0  ;;  %1148 = vmatprep.subr.mxu0 %v1224_v0 }
  0x42   :  { %1110 = vmatpush3.msra.mxu1 %v853_v5  ;;  %1149 = vmatpush3.msra.mxu0 %v451_v6 }
  0x43   :  { %1111 = vmatprep.subr.mxu1 %v1224_v0  ;;  %1150 = vmatprep.subr.mxu0 %v1224_v0 }
  0x44   :  { %1112 = vmatpush3.msra.mxu1 %v852_v7  ;;  %1151 = vmatpush3.msra.mxu0 %v450_v8  ;;  %v878_v8 = vld [vmem:[%s1689_s4 + $0x150] sm:$0xff] }
  0x45   :  { %1175 = vmatprep.subr.mxu1 %v1224_v0  ;;  %1152 = vmatprep.subr.mxu0 %v1224_v0 }
  0x46   :  { %1153 = vmatpush3.msra.mxu0 %v449_v9 }
  0x47   :  { %1154 = vmatprep.subr.mxu0 %v1224_v0 }
  0x48   :  { %1155 = vmatpush3.msra.mxu0 %v448_v10 }
  0x49   :  { %1156 = vmatprep.subr.mxu0 %v1224_v0 }
  0x4a   :  { %1157 = vmatpush3.msra.mxu0 %v447_v11 }
  0x4b   :  { %1158 = vmatprep.subr.mxu0 %v1224_v0 }
  0x4c   :  { %1159 = vmatpush3.msra.mxu0 %v446_v12  ;;  %v877_v12 = vld [vmem:[%s1689_s4 + $0x148] sm:$0xff] }
  0xd1   :  { %v149_v13 = vpop.f32.mrf.mxu0 }
  0xd3   :  { %v254_v14 = vpop.f32.mrf.mxu1  ;;  %v1006_v15 = vpop.f32.mrf.mxu0 }
  0xd4   :  { %v255_v32 = vadd.f32 %v254_v14, %v149_v13  ;;  %v876_v15 = vld [vmem:[%s1689_s4 + $0x140] sm:$0xff] }
  0xd5   :  { %v1037_v16 = vpop.f32.mrf.mxu1  ;;  %v154_v17 = vpop.f32.mrf.mxu0 }
  0xd7   :  { %v259_v18 = vpop.f32.mrf.mxu1  ;;  %v1009_v19 = vpop.f32.mrf.mxu0 }
  0xd8   :  { %v260_v39 = vadd.f32 %v259_v18, %v154_v17  ;;  %v875_v19 = vld [vmem:[%s1689_s4 + $0x138] sm:$0xff] }
  0xd9   :  { %v1040_v20 = vpop.f32.mrf.mxu1  ;;  %v159_v21 = vpop.f32.mrf.mxu0 }
  0xdb   :  { %v264_v22 = vpop.f32.mrf.mxu1  ;;  %v1012_v23 = vpop.f32.mrf.mxu0 }
  0xdc   :  { %v265_v45 = vadd.f32 %v264_v22, %v159_v21  ;;  %v874_v21 = vld [vmem:[%s1689_s4 + $0x130] sm:$0xff] }
  0xdd   :  { %v1043_v24 = vpop.f32.mrf.mxu1  ;;  %v164_v25 = vpop.f32.mrf.mxu0 }
  0xde   :  { %v873_v24 = vld [vmem:[%s1689_s4 + $0x128] sm:$0xff] }
  0xdf   :  { %v269_v26 = vpop.f32.mrf.mxu1  ;;  %v1015_v27 = vpop.f32.mrf.mxu0 }
  0xe0   :  { %v270_v54 = vadd.f32 %v269_v26, %v164_v25  ;;  %v872_v25 = vld [vmem:[%s1689_s4 + $0x120] sm:$0xff]  ;;  %v871_v26 = vld [vmem:[%s1689_s4 + $0x118] sm:$0xff]  ;;  %v870_v27 = vld [vmem:[%s1689_s4 + $0x110] sm:$0xff] }
  0xe1   :  { %v1046_v28 = vpop.f32.mrf.mxu1  ;;  %v169_v29 = vpop.f32.mrf.mxu0 }
  0xe2   :  { %v869_v28 = vld [vmem:[%s1689_s4 + $0x108] sm:$0xff] }
  0xe3   :  { %v274_v30 = vpop.f32.mrf.mxu1  ;;  %v1018_v31 = vpop.f32.mrf.mxu0 }
  0xe4   :  { %v275_v63 = vadd.f32 %v274_v30, %v169_v29  ;;  %v868_v29 = vld [vmem:[%s1689_s4 + $0x100] sm:$0xff] }
  0xe5   :  { %v373_v33 = vpop.f32.mrf.mxu0  ;;  %v1049_v35 = vpop.f32.mrf.mxu1 }
  0xe6   :  { %v397_v36 = vadd.f32 %v373_v33, %v255_v32 }
  0xe7   :  { %v1068_v38 = vpop.f32.mrf.mxu0 }
  0xe8   :  { %v409_v40 = vmul.f32 %v850_v34, %v397_v36 }
  0xe9   :  { %v378_v41 = vpop.f32.mrf.mxu0 }
  0xea   :  { %v421_v42 = vadd.f32 %v851_v37, %v409_v40  ;;  %v398_v43 = vadd.f32 %v378_v41, %v260_v39 }
  0xeb   :  { %v1071_v44 = vpop.f32.mrf.mxu0 }
  0xec   :  { %v426_v46 = vmax.f32 %v421_v42, 0.0  ;;  %v410_v47 = vmul.f32 %v850_v34, %v398_v43 }
  0xed   :  { %v383_v49 = vpop.f32.mrf.mxu0 }
  0xee   :  { %436 = vst [vmem:[#allocation3 + $0x1] sm:$0xff] %v426_v46  ;;  %v422_v50 = vadd.f32 %v851_v37, %v410_v47  ;;  %v399_v51 = vadd.f32 %v383_v49, %v265_v45  ;;  %1114 = vmatmul.mubr.f32.vlgmr.msra.gmra.mxu1 %v426_v46 }
  0xef   :  { %v1074_v53 = vpop.f32.mrf.mxu0  ;;  %1176 = vmatpush3.msra.mxu1 %v883_v48  ;;  %1116 = vmatprep.mubr.msk.f32.mxu1 %vm1225_vm2, %v1224_v0 }
  0xf0   :  { %v427_v55 = vmax.f32 %v422_v50, 0.0  ;;  %v411_v56 = vmul.f32 %v850_v34, %v399_v51  ;;  %1177 = vmatprep.subr.mxu1 %v1224_v0 }
  0xf1   :  { %v388_v58 = vpop.f32.mrf.mxu0  ;;  %1178 = vmatpush3.msra.mxu1 %v882_v52 }
  0xf2   :  { %437 = vst [vmem:[#allocation3 + $0x9] sm:$0xff] %v427_v55  ;;  %v423_v59 = vadd.f32 %v851_v37, %v411_v56  ;;  %v400_v60 = vadd.f32 %v388_v58, %v270_v54  ;;  %1179 = vmatprep.subr.mxu1 %v1224_v0  ;;  %1117 = vmatmul.mubr.f32.gmra.mxu1 %v427_v55  ;;  %v884_v56 = vld [vmem:[%s1692_s5] ss:$0 sm:$0xff] }
  0xf3   :  { %v1077_v62 = vpop.f32.mrf.mxu0  ;;  %1180 = vmatpush3.msra.mxu1 %v881_v57  ;;  %1119 = vmatprep.mubr.msk.f32.mxu1 %vm1225_vm2, %v1224_v0  ;;  %v885_v58 = vld [vmem:[%s1693_s6] ss:$0 sm:$0xff] }
  0xf4   :  { %v428_v1 = vmax.f32 %v423_v59, 0.0  ;;  %v412_v2 = vmul.f32 %v850_v34, %v400_v60  ;;  %1181 = vmatprep.subr.mxu1 %v1224_v0 }
  0xf5   :  { %v393_v4 = vpop.f32.mrf.mxu0  ;;  %v441_v5 = vld [vmem:[#allocation3] sm:$0xff]  ;;  %1182 = vmatpush3.msra.mxu1 %v880_v61 }
  0xf6   :  { %438 = vst [vmem:[#allocation3 + $0x11] sm:$0xfc] %v428_v1  ;;  %v424_v6 = vadd.f32 %v851_v37, %v412_v2  ;;  %v401_v7 = vadd.f32 %v393_v4, %v275_v63  ;;  %1161 = vmatmul.mubr.f32.vlgmr.msra.gmra.mxu0 %v441_v5  ;;  %1183 = vmatprep.subr.mxu1 %v1224_v0 }
  0xf7   :  { %1163 = vmatprep.mubr.msk.f32.mxu0 %vm1225_vm2, %v1224_v0  ;;  %1184 = vmatpush3.msra.mxu1 %v879_v3  ;;  %v1080_v9 = vpop.f32.mrf.mxu0 }
  0xf8   :  { %v429_v10 = vmax.f32 %v424_v6, 0.0  ;;  %v413_v11 = vmul.f32 %v850_v34, %v401_v7  ;;  %1185 = vmatprep.subr.mxu1 %v1224_v0 }
  0xf9   :  { %v442_v13 = vld [vmem:[#allocation3 + $0x8] sm:$0xff]  ;;  %1186 = vmatpush3.msra.mxu1 %v878_v8 }
  0xfa   :  { %439 = vst [vmem:[#allocation3 + $0x19] sm:$0xff] %v429_v10  ;;  %v425_v14 = vadd.f32 %v851_v37, %v413_v11  ;;  %1164 = vmatmul.mubr.f32.gmra.mxu0 %v442_v13  ;;  %1187 = vmatprep.subr.mxu1 %v1224_v0  ;;  %v664_v30 = vld [vmem:[#allocation3 + $0x2] sm:$0xff]  ;;  %v665_v31 = vld [vmem:[#allocation3 + $0xa] sm:$0xff] }
  0xfb   :  { %1166 = vmatprep.mubr.msk.f32.mxu0 %vm1225_vm2, %v1224_v0  ;;  %1188 = vmatpush3.msra.mxu1 %v877_v12 }
  0xfc   :  { %v430_v16 = vmax.f32 %v425_v14, 0.0  ;;  %1189 = vmatprep.subr.mxu1 %v1224_v0 }
  0xfd   :  { %v464_v17 = vld [vmem:[#allocation3 + $0x11] sm:$0xff]  ;;  %1190 = vmatpush3.msra.mxu1 %v876_v15 }
  0xfe   :  { %v443_v18 = vld [vmem:[#allocation3 + $0x10] sm:$0xff]  ;;  %440 = vst [vmem:[#allocation3 + $0x21] sm:$0x3] %v430_v16  ;;  %1120 = vmatmul.mubr.f32.gmra.mxu1 %v464_v17  ;;  %1191 = vmatprep.subr.mxu1 %v1224_v0 }
  0xff   :  { %1167 = vmatmul.mubr.f32.gmra.mxu0 %v443_v18  ;;  %1122 = vmatprep.mubr.msk.f32.mxu1 %vm1225_vm2, %v1224_v0 }
 0x100   :  { %1169 = vmatprep.mubr.msk.f32.mxu0 %vm1225_vm2, %v1224_v0  ;;  %1192 = vmatpush3.msra.mxu1 %v875_v19 }
 0x101   :  { %v444_v20 = vld [vmem:[#allocation3 + $0x18] sm:$0xff]  ;;  %1193 = vmatprep.subr.mxu1 %v1224_v0 }
 0x102   :  { %1123 = vmatmul.mubr.f32.gmra.mxu1 %v429_v10  ;;  %v666_v32 = vld [vmem:[#allocation3 + $0x12] sm:$0xff] }
 0x103   :  { %1170 = vmatmul.mubr.f32.gmra.mxu0 %v444_v20  ;;  %1125 = vmatprep.mubr.msk.f32.mxu1 %vm1225_vm2, %v1224_v0 }
 0x104   :  { %1172 = vmatprep.mubr.msk.f32.mxu0 %vm1225_vm2, %v1224_v0  ;;  %1194 = vmatpush3.msra.mxu1 %v874_v21 }
 0x105   :  { %v466_v22 = vld [vmem:[#allocation3 + $0x21] sm:$0x3]  ;;  %1195 = vmatprep.subr.mxu1 %v1224_v0 }
 0x106   :  { %v445_v23 = vld [vmem:[#allocation3 + $0x20] sm:$0x3]  ;;  %1126 = vmatmul.mubr.f32.gmra.mxu1 %v466_v22  ;;  %v668_v34 = vld [vmem:[#allocation3 + $0x22] sm:$0x3] }
 0x107   :  { %1173 = vmatmul.mubr.f32.gmra.mxu0 %v445_v23  ;;  %1207 = vmatprep.mubr.msk.f32.mxu1 %vm1225_vm2, %v1224_v0  ;;  %v667_v33 = vld [vmem:[#allocation3 + $0x1a] sm:$0xff] }
 0x108   :  { %1196 = vmatpush3.msra.mxu1 %v873_v24 }
 0x109   :  { %1197 = vmatprep.subr.mxu1 %v1224_v0 }
 0x10a   :  { %1198 = vmatpush3.msra.mxu1 %v872_v25 }
 0x10b   :  { %1199 = vmatprep.subr.mxu1 %v1224_v0 }
 0x10c   :  { %1200 = vmatpush3.msra.mxu1 %v871_v26 }
 0x10d   :  { %1201 = vmatprep.subr.mxu1 %v1224_v0 }
 0x10e   :  { %1202 = vmatpush3.msra.mxu1 %v870_v27 }
 0x10f   :  { %1203 = vmatprep.subr.mxu1 %v1224_v0 }
 0x110   :  { %1204 = vmatpush3.msra.mxu1 %v869_v28 }
 0x111   :  { %1205 = vmatprep.subr.mxu1 %v1224_v0 }
 0x112   :  { %1206 = vmatpush3.msra.mxu1 %v868_v29 }
 0x113   :  { %1208 = vmatmul.mubr.f32.vlgmr.msra.gmra.mxu1 %v664_v30 }
 0x114   :  { %1210 = vmatprep.mubr.msk.f32.mxu1 %vm1225_vm2, %v1224_v0 }
 0x117   :  { %1211 = vmatmul.mubr.f32.gmra.mxu1 %v665_v31 }
 0x118   :  { %1213 = vmatprep.mubr.msk.f32.mxu1 %vm1225_vm2, %v1224_v0 }
 0x11b   :  { %1214 = vmatmul.mubr.f32.gmra.mxu1 %v666_v32 }
 0x11c   :  { %1216 = vmatprep.mubr.msk.f32.mxu1 %vm1225_vm2, %v1224_v0 }
 0x11f   :  { %1217 = vmatmul.mubr.f32.gmra.mxu1 %v667_v33 }
 0x120   :  { %1219 = vmatprep.mubr.msk.f32.mxu1 %vm1225_vm2, %v1224_v0 }
 0x123   :  { %1220 = vmatmul.mubr.f32.gmra.mxu1 %v668_v34 }
 0x1ae   :  { %v550_v35 = vpop.f32.mrf.mxu1 }
 0x1b0   :  { %v1115_v36 = vpop.f32.mrf.mxu1 }
 0x1b2   :  { %v555_v37 = vpop.f32.mrf.mxu1 }
 0x1b4   :  { %v1118_v38 = vpop.f32.mrf.mxu1 }
 0x1b6   :  { %v640_v39 = vpop.f32.mrf.mxu0 }
 0x1b7   :  { %v641_v54 = vadd.f32 %v640_v39, %v550_v35 }
 0x1b8   :  { %v1162_v40 = vpop.f32.mrf.mxu0 }
 0x1ba   :  { %v645_v41 = vpop.f32.mrf.mxu0 }
 0x1bb   :  { %v646_v60 = vadd.f32 %v645_v41, %v555_v37 }
 0x1bc   :  { %v1165_v42 = vpop.f32.mrf.mxu0 }
 0x1be   :  { %v560_v43 = vpop.f32.mrf.mxu1 }
 0x1bf   :  { %v650_v44 = vpop.f32.mrf.mxu0 }
 0x1c0   :  { %v1121_v45 = vpop.f32.mrf.mxu1  ;;  %v651_v3 = vadd.f32 %v650_v44, %v560_v43 }
 0x1c1   :  { %v1168_v46 = vpop.f32.mrf.mxu0 }
 0x1c2   :  { %v565_v47 = vpop.f32.mrf.mxu1 }
 0x1c3   :  { %v655_v48 = vpop.f32.mrf.mxu0 }
 0x1c4   :  { %v1124_v49 = vpop.f32.mrf.mxu1  ;;  %v656_v10 = vadd.f32 %v655_v48, %v565_v47 }
 0x1c5   :  { %v1171_v50 = vpop.f32.mrf.mxu0 }
 0x1c6   :  { %v570_v51 = vpop.f32.mrf.mxu1 }
 0x1c7   :  { %v660_v0 = vpop.f32.mrf.mxu0 }
 0x1c8   :  { %v1127_v52 = vpop.f32.mrf.mxu1  ;;  %v661_v17 = vadd.f32 %v660_v0, %v570_v51 }
 0x1c9   :  { %v1174_v53 = vpop.f32.mrf.mxu0 }
 0x1d3   :  { %v752_v55 = vpop.f32.mrf.mxu1 }
 0x1d4   :  { %v776_v57 = vadd.f32 %v752_v55, %v641_v54 }
 0x1d5   :  { %v1209_v59 = vpop.f32.mrf.mxu1 }
 0x1d6   :  { %v788_v61 = vmul.f32 %v884_v56, %v776_v57 }
 0x1d7   :  { %v757_v62 = vpop.f32.mrf.mxu1 }
 0x1d8   :  { %v800_v63 = vadd.f32 %v885_v58, %v788_v61  ;;  %v777_v1 = vadd.f32 %v757_v62, %v646_v60 }
 0x1d9   :  { %v1212_v2 = vpop.f32.mrf.mxu1 }
 0x1da   :  { %v805_v4 = vmax.f32 %v800_v63, 0.0  ;;  %v789_v5 = vmul.f32 %v884_v56, %v777_v1 }
 0x1db   :  { %v762_v6 = vpop.f32.mrf.mxu1 }
 0x1dc   :  { %810 = vst [vmem:[%s1694_s7] sm:$0xff] %v805_v4  ;;  %v801_v7 = vadd.f32 %v885_v58, %v789_v5  ;;  %v778_v8 = vadd.f32 %v762_v6, %v651_v3 }
 0x1dd   :  { %v1215_v9 = vpop.f32.mrf.mxu1 }
 0x1de   :  { %v806_v11 = vmax.f32 %v801_v7, 0.0  ;;  %v790_v12 = vmul.f32 %v884_v56, %v778_v8 }
 0x1df   :  { %v767_v13 = vpop.f32.mrf.mxu1 }
 0x1e0   :  { %811 = vst [vmem:[%s1694_s7 + $0x8] sm:$0xff] %v806_v11  ;;  %v802_v14 = vadd.f32 %v885_v58, %v790_v12  ;;  %v779_v15 = vadd.f32 %v767_v13, %v656_v10 }
 0x1e1   :  { %v1218_v16 = vpop.f32.mrf.mxu1 }
 0x1e2   :  { %v807_v18 = vmax.f32 %v802_v14, 0.0  ;;  %v791_v19 = vmul.f32 %v884_v56, %v779_v15 }
 0x1e3   :  { %v772_v20 = vpop.f32.mrf.mxu1 }
 0x1e4   :  { %812 = vst [vmem:[%s1694_s7 + $0xe] sm:$0xfc] %v807_v18  ;;  %v803_v21 = vadd.f32 %v885_v58, %v791_v19  ;;  %v780_v22 = vadd.f32 %v772_v20, %v661_v17 }
 0x1e5   :  { %v1221_v23 = vpop.f32.mrf.mxu1 }
 0x1e6   :  { %v808_v24 = vmax.f32 %v803_v21, 0.0  ;;  %v792_v25 = vmul.f32 %v884_v56, %v780_v22 }
 0x1e8   :  { %813 = vst [vmem:[%s1694_s7 + $0x16] sm:$0xff] %v808_v24  ;;  %v804_v26 = vadd.f32 %v885_v58, %v792_v25 }
 0x1ea   :  { %v809_v27 = vmax.f32 %v804_v26, 0.0 }
 0x1ec   :  { %814 = vst [vmem:[%s1694_s7 + $0x1e] sm:$0x3] %v809_v27 }

</bundles_post_ra>
